<compile_context>
chip_gen: v7x
topology: tpu7x:2x2x1
jax: 0.10.0
libtpu: 0.0.40
codegen_flags: <defaults>
</compile_context>

<pallas_src>
import functools

import jax
import jax.numpy as jnp
from jax.experimental import pallas as pl
from jax.experimental.pallas import tpu as pltpu


def _round_up(x, m):
    return ((x + m - 1) // m) * m


def mlp_predictor_kernel(alpha_ref, x_ref, w1_ref, b1_ref, w2_ref, b2_ref, o_ref):
    """Fused: h = PReLU(x @ W1 + b1); o = h @ W2 + b2 (f32 accumulate on the MXU)."""
    # First linear: native-dtype operands on the MXU, f32 accumulation.
    h = jnp.dot(x_ref[...], w1_ref[...], preferred_element_type=jnp.float32)
    h = h + b1_ref[...].astype(jnp.float32)          # (bm, H) + (1, H) broadcast

    # PReLU with a single shared parameter alpha (nn.PReLU(1)); epilogue in f32.
    alpha = alpha_ref[0]
    h = jnp.where(h >= 0, h, alpha * h)

    # Second linear: cast activations back to the weight dtype for the MXU.
    h = h.astype(w2_ref.dtype)
    y = jnp.dot(h, w2_ref[...], preferred_element_type=jnp.float32)
    y = y + b2_ref[...].astype(jnp.float32)          # (bm, O) + (1, O) broadcast

    o_ref[...] = y.astype(o_ref.dtype)


@functools.partial(jax.jit, static_argnames=("block_m", "use_buffered_weights"))
def mlp_predictor(x, w1, b1, w2, b2, alpha, *, block_m=None, use_buffered_weights=True):
    """x: (N, In) -> (N, Out).  Weights: w1 (In, H), b1 (H,), w2 (H, Out), b2 (Out,)."""
    n, in_dim = x.shape
    hidden = w1.shape[1]
    out_dim = w2.shape[1]

    # Row-tile size: multiple of 8 (f32) / 16 (bf16), aim for ~512 rows at large N.
    min_rows = 16 if x.dtype == jnp.bfloat16 else 8
    if block_m is None:
        block_m = min(512, _round_up(n, min_rows))
    block_m = _round_up(int(block_m), min_rows)

    # Pad batch to a multiple of block_m and all feature dims to multiples of 128
    # (lane-dense loads/stores, full-width MXU tiles).
    n_pad = _round_up(n, block_m)
    in_p = _round_up(in_dim, 128)
    hid_p = _round_up(hidden, 128)
    out_p = _round_up(out_dim, 128)

    x_p = jnp.pad(x, ((0, n_pad - n), (0, in_p - in_dim)))
    w1_p = jnp.pad(w1, ((0, in_p - in_dim), (0, hid_p - hidden)))
    b1_p = jnp.pad(b1, (0, hid_p - hidden)).reshape(1, hid_p)
    w2_p = jnp.pad(w2, ((0, hid_p - hidden), (0, out_p - out_dim)))
    b2_p = jnp.pad(b2, (0, out_p - out_dim)).reshape(1, out_p)
    alpha_arr = jnp.asarray(alpha, jnp.float32).reshape(1)

    grid = (n_pad // block_m,)

    def resident(shape):
        # Constant block index across the grid -> single buffer is enough.
        if use_buffered_weights:
            return pl.BlockSpec(shape, lambda i: (0, 0), pipeline_mode=pl.Buffered(1))
        return pl.BlockSpec(shape, lambda i: (0, 0))

    # VMEM budget: 2x double-buffered x tile + 2x out tile + resident weights/biases.
    act_item = x.dtype.itemsize
    w_item = w1.dtype.itemsize
    x_tile_bytes = block_m * in_p * act_item
    o_tile_bytes = block_m * out_p * act_item
    w_bytes = (in_p * hid_p + hid_p * out_p + hid_p + out_p) * w_item
    w_bufs = 1 if use_buffered_weights else 2
    vmem_needed = 2 * x_tile_bytes + 2 * o_tile_bytes + w_bufs * w_bytes
    vmem_limit = int(min(max(int(vmem_needed * 1.5) + (2 << 20), 8 << 20), 64 << 20))

    flops = 2 * n_pad * (in_p * hid_p + hid_p * out_p)
    bytes_accessed = (n_pad * in_p * act_item + n_pad * out_p * act_item
                      + (in_p * hid_p + hid_p * out_p + hid_p + out_p) * w_item)

    out_padded = pl.pallas_call(
        mlp_predictor_kernel,
        out_shape=jax.ShapeDtypeStruct((n_pad, out_p), x.dtype),
        grid_spec=pltpu.PrefetchScalarGridSpec(
            num_scalar_prefetch=0,
            grid=grid,
            in_specs=[
                pl.BlockSpec(memory_space=pltpu.SMEM),              # alpha (scalar)
                pl.BlockSpec((block_m, in_p), lambda i: (i, 0)),    # x row tile
                resident((in_p, hid_p)),                            # W1 (resident)
                resident((1, hid_p)),                               # b1
                resident((hid_p, out_p)),                           # W2 (resident)
                resident((1, out_p)),                               # b2
            ],
            out_specs=pl.BlockSpec((block_m, out_p), lambda i: (i, 0)),
        ),
        compiler_params=pltpu.CompilerParams(
            dimension_semantics=("parallel",),
            vmem_limit_bytes=vmem_limit,
        ),
        cost_estimate=pl.CostEstimate(
            flops=flops, transcendentals=0, bytes_accessed=bytes_accessed),
    )(alpha_arr, x_p, w1_p, b1_p, w2_p, b2_p)

    # Strip row/column padding.
    return out_padded[:n, :out_dim]


def init_params(key, input_size, output_size, hidden_size):
    """Deterministic init mimicking nn.Linear.reset_parameters (Kaiming-uniform)."""
    k1, k2, k3, k4 = jax.random.split(key, 4)
    bound1 = 1.0 / jnp.sqrt(input_size)
    bound2 = 1.0 / jnp.sqrt(hidden_size)
    # Stored pre-transposed: (in, out).
    w1 = jax.random.uniform(k1, (input_size, hidden_size), jnp.float32, -bound1, bound1)
    b1 = jax.random.uniform(k2, (hidden_size,), jnp.float32, -bound1, bound1)
    w2 = jax.random.uniform(k3, (hidden_size, output_size), jnp.float32, -bound2, bound2)
    b2 = jax.random.uniform(k4, (output_size,), jnp.float32, -bound2, bound2)
    alpha = jnp.float32(0.25)  # nn.PReLU default init
    return w1, b1, w2, b2, alpha


def reference(x, w1, b1, w2, b2, alpha):
    h = x @ w1 + b1
    h = jnp.where(h >= 0, h, alpha * h)
    return h @ w2 + b2


if __name__ == "__main__":
    # Small shapes consistent with the module: x is (batch, input_size).
    batch, input_size, hidden_size, output_size = 8, 32, 64, 32

    key = jax.random.PRNGKey(0)
    kx, kp = jax.random.split(key)
    x = jax.random.normal(kx, (batch, input_size), jnp.float32)
    w1, b1, w2, b2, alpha = init_params(kp, input_size, output_size, hidden_size)

    use_buf = True
    try:
        out = jax.block_until_ready(mlp_predictor(x, w1, b1, w2, b2, alpha))
    except Exception:
        # Fallback if this JAX build rejects pipeline_mode=pl.Buffered(1).
        use_buf = False
        out = jax.block_until_ready(
            mlp_predictor(x, w1, b1, w2, b2, alpha, use_buffered_weights=False))

    ref = reference(x, w1, b1, w2, b2, alpha)
    assert out.shape == (batch, output_size)
    assert jnp.allclose(out, ref, atol=1e-5, rtol=1e-5), "mismatch vs reference"

    # Second check: non-divisible batch + multi-step pipelined grid (row padding path).
    kx2, _ = jax.random.split(kx)
    x2 = jax.random.normal(kx2, (37, input_size), jnp.float32)
    out2 = jax.block_until_ready(
        mlp_predictor(x2, w1, b1, w2, b2, alpha, block_m=8,
                      use_buffered_weights=use_buf))
    ref2 = reference(x2, w1, b1, w2, b2, alpha)
    assert out2.shape == (37, output_size)
    assert jnp.allclose(out2, ref2, atol=1e-5, rtol=1e-5), "mismatch vs reference (tiled)"

    print("KERNEL_OK")
</pallas_src>

<mosaic_0001>
module attributes {stable_mosaic.version = 11 : i64} {
  func.func @mlp_predictor_kernel(%arg0: i32, %arg1: memref<1xf32, #tpu.memory_space<smem>>, %arg2: memref<8x128xf32, #tpu.memory_space<vmem>>, %arg3: memref<128x128xf32, #tpu.memory_space<vmem>>, %arg4: memref<1x128xf32, #tpu.memory_space<vmem>>, %arg5: memref<128x128xf32, #tpu.memory_space<vmem>>, %arg6: memref<1x128xf32, #tpu.memory_space<vmem>>, %arg7: memref<8x128xf32, #tpu.memory_space<vmem>>) attributes {dimension_semantics = [#tpu.dimension_semantics<parallel>], iteration_bounds = array<i64: 1>, scalar_prefetch = 0 : i64, scratch_operands = 0 : i64, tpu.core_type = #tpu.core_type<tc>, window_params = [{transform_indices = @transform_0, window_bounds = array<i64: 1>}, {transform_indices = @transform_1, window_bounds = array<i64: 8, 128>}, {pipeline_mode = #tpu.pipeline_mode<synchronous>, transform_indices = @transform_2, window_bounds = array<i64: 128, 128>}, {pipeline_mode = #tpu.pipeline_mode<synchronous>, transform_indices = @transform_3, window_bounds = array<i64: 1, 128>}, {pipeline_mode = #tpu.pipeline_mode<synchronous>, transform_indices = @transform_4, window_bounds = array<i64: 128, 128>}, {pipeline_mode = #tpu.pipeline_mode<synchronous>, transform_indices = @transform_5, window_bounds = array<i64: 1, 128>}, {transform_indices = @transform_6, window_bounds = array<i64: 8, 128>}]} {
    %c0 = arith.constant 0 : index
    %c0_0 = arith.constant 0 : index
    %0 = vector.load %arg2[%c0, %c0_0] : memref<8x128xf32, #tpu.memory_space<vmem>>, vector<8x128xf32>
    %c0_1 = arith.constant 0 : index
    %c0_2 = arith.constant 0 : index
    %1 = vector.load %arg3[%c0_1, %c0_2] : memref<128x128xf32, #tpu.memory_space<vmem>>, vector<128x128xf32>
    %cst = arith.constant dense<0.000000e+00> : vector<8x128xf32>
    %2 = tpu.matmul %0, %1, %cst {dimension_numbers = #tpu.dot_dimension_numbers<[1], [0], [0], [1], [0, 0, 1, 1], [], []>} : vector<8x128xf32>, vector<128x128xf32>, vector<8x128xf32> -> vector<8x128xf32>
    %c0_3 = arith.constant 0 : index
    %c0_4 = arith.constant 0 : index
    %3 = vector.load %arg4[%c0_3, %c0_4] : memref<1x128xf32, #tpu.memory_space<vmem>>, vector<1x128xf32>
    %4 = vector.broadcast %3 : vector<1x128xf32> to vector<8x128xf32>
    %5 = arith.addf %2, %4 : vector<8x128xf32>
    %c0_5 = arith.constant 0 : index
    %6 = memref.load %arg1[%c0_5] : memref<1xf32, #tpu.memory_space<smem>>
    %cst_6 = arith.constant 0.000000e+00 : f32
    %7 = vector.broadcast %cst_6 : f32 to vector<8x128xf32>
    %8 = arith.cmpf oge, %5, %7 : vector<8x128xf32>
    %9 = vector.broadcast %6 : f32 to vector<8x128xf32>
    %10 = arith.mulf %9, %5 : vector<8x128xf32>
    %11 = arith.select %8, %5, %10 : vector<8x128xi1>, vector<8x128xf32>
    %c0_7 = arith.constant 0 : index
    %c0_8 = arith.constant 0 : index
    %12 = vector.load %arg5[%c0_7, %c0_8] : memref<128x128xf32, #tpu.memory_space<vmem>>, vector<128x128xf32>
    %cst_9 = arith.constant dense<0.000000e+00> : vector<8x128xf32>
    %13 = tpu.matmul %11, %12, %cst_9 {dimension_numbers = #tpu.dot_dimension_numbers<[1], [0], [0], [1], [0, 0, 1, 1], [], []>} : vector<8x128xf32>, vector<128x128xf32>, vector<8x128xf32> -> vector<8x128xf32>
    %c0_10 = arith.constant 0 : index
    %c0_11 = arith.constant 0 : index
    %14 = vector.load %arg6[%c0_10, %c0_11] : memref<1x128xf32, #tpu.memory_space<vmem>>, vector<1x128xf32>
    %15 = vector.broadcast %14 : vector<1x128xf32> to vector<8x128xf32>
    %16 = arith.addf %13, %15 : vector<8x128xf32>
    %c0_12 = arith.constant 0 : index
    %c0_13 = arith.constant 0 : index
    %17 = vector.load %arg7[%c0_12, %c0_13] : memref<8x128xf32, #tpu.memory_space<vmem>>, vector<8x128xf32>
    tpu.vector_store %arg7[%c0_12, %c0_13], %16 {strides = array<i32>} : memref<8x128xf32, #tpu.memory_space<vmem>>, vector<8x128xf32>,
    return
  }
  func.func @transform_0(%arg0: i32) -> i32 {
    %c0_i32 = arith.constant 0 : i32
    %c0_i32_0 = arith.constant 0 : i32
    return %c0_i32 : i32
  }
  func.func @transform_1(%arg0: i32) -> (i32, i32) {
    %c0_i32 = arith.constant 0 : i32
    %c0_i32_0 = arith.constant 0 : i32
    return %arg0, %c0_i32 : i32, i32
  }
  func.func @transform_2(%arg0: i32) -> (i32, i32) {
    %c0_i32 = arith.constant 0 : i32
    %c0_i32_0 = arith.constant 0 : i32
    %c0_i32_1 = arith.constant 0 : i32
    return %c0_i32, %c0_i32_0 : i32, i32
  }
  func.func @transform_3(%arg0: i32) -> (i32, i32) {
    %c0_i32 = arith.constant 0 : i32
    %c0_i32_0 = arith.constant 0 : i32
    %c0_i32_1 = arith.constant 0 : i32
    return %c0_i32, %c0_i32_0 : i32, i32
  }
  func.func @transform_4(%arg0: i32) -> (i32, i32) {
    %c0_i32 = arith.constant 0 : i32
    %c0_i32_0 = arith.constant 0 : i32
    %c0_i32_1 = arith.constant 0 : i32
    return %c0_i32, %c0_i32_0 : i32, i32
  }
  func.func @transform_5(%arg0: i32) -> (i32, i32) {
    %c0_i32 = arith.constant 0 : i32
    %c0_i32_0 = arith.constant 0 : i32
    %c0_i32_1 = arith.constant 0 : i32
    return %c0_i32, %c0_i32_0 : i32, i32
  }
  func.func @transform_6(%arg0: i32) -> (i32, i32) {
    %c0_i32 = arith.constant 0 : i32
    %c0_i32_0 = arith.constant 0 : i32
    return %arg0, %c0_i32 : i32, i32
  }
}

module attributes {stable_mosaic.version = 11 : i64} {
  func.func @mlp_predictor_kernel(%arg0: i32, %arg1: memref<1xf32, #tpu.memory_space<smem>>, %arg2: memref<8x128xf32, #tpu.memory_space<vmem>>, %arg3: memref<128x128xf32, #tpu.memory_space<vmem>>, %arg4: memref<1x128xf32, #tpu.memory_space<vmem>>, %arg5: memref<128x128xf32, #tpu.memory_space<vmem>>, %arg6: memref<1x128xf32, #tpu.memory_space<vmem>>, %arg7: memref<8x128xf32, #tpu.memory_space<vmem>>) attributes {dimension_semantics = [#tpu.dimension_semantics<parallel>], iteration_bounds = array<i64: 1>, scalar_prefetch = 0 : i64, scratch_operands = 0 : i64, tpu.core_type = #tpu.core_type<tc>, window_params = [{transform_indices = @transform_0, window_bounds = array<i64: 1>}, {transform_indices = @transform_1, window_bounds = array<i64: 8, 128>}, {pipeline_mode = #tpu.pipeline_mode<synchronous>, transform_indices = @transform_2, window_bounds = array<i64: 128, 128>}, {pipeline_mode = #tpu.pipeline_mode<synchronous>, transform_indices = @transform_3, window_bounds = array<i64: 1, 128>}, {pipeline_mode = #tpu.pipeline_mode<synchronous>, transform_indices = @transform_4, window_bounds = array<i64: 128, 128>}, {pipeline_mode = #tpu.pipeline_mode<synchronous>, transform_indices = @transform_5, window_bounds = array<i64: 1, 128>}, {transform_indices = @transform_6, window_bounds = array<i64: 8, 128>}]} {
    %c0 = arith.constant 0 : index
    %c0_0 = arith.constant 0 : index
    %0 = vector.load %arg2[%c0, %c0_0] : memref<8x128xf32, #tpu.memory_space<vmem>>, vector<8x128xf32>
    %c0_1 = arith.constant 0 : index
    %c0_2 = arith.constant 0 : index
    %1 = vector.load %arg3[%c0_1, %c0_2] : memref<128x128xf32, #tpu.memory_space<vmem>>, vector<128x128xf32>
    %cst = arith.constant dense<0.000000e+00> : vector<8x128xf32>
    %2 = tpu.matmul %0, %1, %cst {dimension_numbers = #tpu.dot_dimension_numbers<[1], [0], [0], [1], [0, 0, 1, 1], [], []>} : vector<8x128xf32>, vector<128x128xf32>, vector<8x128xf32> -> vector<8x128xf32>
    %c0_3 = arith.constant 0 : index
    %c0_4 = arith.constant 0 : index
    %3 = vector.load %arg4[%c0_3, %c0_4] : memref<1x128xf32, #tpu.memory_space<vmem>>, vector<1x128xf32>
    %4 = vector.broadcast %3 : vector<1x128xf32> to vector<8x128xf32>
    %5 = arith.addf %2, %4 : vector<8x128xf32>
    %c0_5 = arith.constant 0 : index
    %6 = memref.load %arg1[%c0_5] : memref<1xf32, #tpu.memory_space<smem>>
    %cst_6 = arith.constant 0.000000e+00 : f32
    %7 = vector.broadcast %cst_6 : f32 to vector<8x128xf32>
    %8 = arith.cmpf oge, %5, %7 : vector<8x128xf32>
    %9 = vector.broadcast %6 : f32 to vector<8x128xf32>
    %10 = arith.mulf %9, %5 : vector<8x128xf32>
    %11 = arith.select %8, %5, %10 : vector<8x128xi1>, vector<8x128xf32>
    %c0_7 = arith.constant 0 : index
    %c0_8 = arith.constant 0 : index
    %12 = vector.load %arg5[%c0_7, %c0_8] : memref<128x128xf32, #tpu.memory_space<vmem>>, vector<128x128xf32>
    %cst_9 = arith.constant dense<0.000000e+00> : vector<8x128xf32>
    %13 = tpu.matmul %11, %12, %cst_9 {dimension_numbers = #tpu.dot_dimension_numbers<[1], [0], [0], [1], [0, 0, 1, 1], [], []>} : vector<8x128xf32>, vector<128x128xf32>, vector<8x128xf32> -> vector<8x128xf32>
    %c0_10 = arith.constant 0 : index
    %c0_11 = arith.constant 0 : index
    %14 = vector.load %arg6[%c0_10, %c0_11] : memref<1x128xf32, #tpu.memory_space<vmem>>, vector<1x128xf32>
    %15 = vector.broadcast %14 : vector<1x128xf32> to vector<8x128xf32>
    %16 = arith.addf %13, %15 : vector<8x128xf32>
    %c0_12 = arith.constant 0 : index
    %c0_13 = arith.constant 0 : index
    %17 = vector.load %arg7[%c0_12, %c0_13] : memref<8x128xf32, #tpu.memory_space<vmem>>, vector<8x128xf32>
    tpu.vector_store %arg7[%c0_12, %c0_13], %16 {strides = array<i32>} : memref<8x128xf32, #tpu.memory_space<vmem>>, vector<8x128xf32>,
    return
  }
  func.func @transform_0(%arg0: i32) -> i32 {
    %c0_i32 = arith.constant 0 : i32
    %c0_i32_0 = arith.constant 0 : i32
    return %c0_i32 : i32
  }
  func.func @transform_1(%arg0: i32) -> (i32, i32) {
    %c0_i32 = arith.constant 0 : i32
    %c0_i32_0 = arith.constant 0 : i32
    return %arg0, %c0_i32 : i32, i32
  }
  func.func @transform_2(%arg0: i32) -> (i32, i32) {
    %c0_i32 = arith.constant 0 : i32
    %c0_i32_0 = arith.constant 0 : i32
    %c0_i32_1 = arith.constant 0 : i32
    return %c0_i32, %c0_i32_0 : i32, i32
  }
  func.func @transform_3(%arg0: i32) -> (i32, i32) {
    %c0_i32 = arith.constant 0 : i32
    %c0_i32_0 = arith.constant 0 : i32
    %c0_i32_1 = arith.constant 0 : i32
    return %c0_i32, %c0_i32_0 : i32, i32
  }
  func.func @transform_4(%arg0: i32) -> (i32, i32) {
    %c0_i32 = arith.constant 0 : i32
    %c0_i32_0 = arith.constant 0 : i32
    %c0_i32_1 = arith.constant 0 : i32
    return %c0_i32, %c0_i32_0 : i32, i32
  }
  func.func @transform_5(%arg0: i32) -> (i32, i32) {
    %c0_i32 = arith.constant 0 : i32
    %c0_i32_0 = arith.constant 0 : i32
    %c0_i32_1 = arith.constant 0 : i32
    return %c0_i32, %c0_i32_0 : i32, i32
  }
  func.func @transform_6(%arg0: i32) -> (i32, i32) {
    %c0_i32 = arith.constant 0 : i32
    %c0_i32_0 = arith.constant 0 : i32
    return %arg0, %c0_i32 : i32, i32
  }
}

</mosaic_0001>

<bundles_post_ra>
// kernel: mlp_predictor.1
= control target key start
LH: loop header
LB: loop body
LE: loop exit
PB: predicated region body
PF: predicated region fallthrough
CT: control target
= control target key end

     0   :  { %v414_v3 = vmov 0.0|0.0   ;;  %vm415_vm0 = vmmov 0   ;;  %v416_v6 = vmov 0.0   ;;  %s589_s0 = inlined_call_operand.<no memory space> [shape: f32[1], index: 0, kind: input, shape index: {}]   ;;  %s590_s1 = inlined_call_operand.vmem [shape: f32[8,128], index: 1, kind: input, shape index: {}]   ;;  %s591_s2 = inlined_call_operand.vmem [shape: f32[128,128], index: 2, kind: input, shape index: {}]   ;;  %s592_s3 = inlined_call_operand.vmem [shape: f32[1,128], index: 3, kind: input, shape index: {}]   ;;  %s593_s4 = inlined_call_operand.vmem [shape: f32[128,128], index: 4, kind: input, shape index: {}]   ;;  %s594_s5 = inlined_call_operand.vmem [shape: f32[1,128], index: 5, kind: input, shape index: {}]   ;;  %s595_s6 = inlined_call_operand.hbm [shape: f32[8,128], index: 6, kind: output, shape index: {}]  }
   0x1   :  { %v26_v0 = vld [vmem:[%s591_s2] sm:$0xff]  ;;  %v27_v1 = vld [vmem:[%s591_s2 + $0x8] sm:$0xff]  ;;  %v28_v2 = vld [vmem:[%s591_s2 + $0x10] sm:$0xff]  ;;  %338 = vmatprep.subr.bf16.mxu0 %v414_v3  ;;  %300 = vmatprep.mubr.msk.f32.mxu0 %vm415_vm0, %v416_v6 }
   0x2   :  { %v339_v4 = vpack.c.bf16 %v27_v1, %v26_v0  ;;  %v29_v5 = vld [vmem:[%s591_s2 + $0x18] sm:$0xff]  ;;  %362 = vmatprep.subr.bf16.mxu1 %v414_v3  ;;  %335 = vmatprep.mubr.msk.f32.mxu1 %vm415_vm0, %v416_v6  ;;  %v30_v8 = vld [vmem:[%s591_s2 + $0x20] sm:$0xff]  ;;  %v31_v9 = vld [vmem:[%s591_s2 + $0x28] sm:$0xff] }
   0x3   :  { %v342_v7 = vpack.c.bf16 %v29_v5, %v28_v2  ;;  %v124_v10 = vld [vmem:[%s593_s4] sm:$0xff]  ;;  %v125_v11 = vld [vmem:[%s593_s4 + $0x8] sm:$0xff]  ;;  %v126_v12 = vld [vmem:[%s593_s4 + $0x10] sm:$0xff]  ;;  %v345_v14 = vpack.c.bf16 %v31_v9, %v30_v8 }
   0x4   :  { %340 = vmatpush3.bf16.msra.mxu0 %v339_v4  ;;  %v127_v13 = vld [vmem:[%s593_s4 + $0x18] sm:$0xff]  ;;  %v363_v15 = vpack.c.bf16 %v125_v11, %v124_v10  ;;  %v32_v16 = vld [vmem:[%s591_s2 + $0x30] sm:$0xff]  ;;  %v128_v19 = vld [vmem:[%s593_s4 + $0x20] sm:$0xff] }
   0x5   :  { %341 = vmatprep.subr.bf16.mxu0 %v414_v3  ;;  %v33_v17 = vld [vmem:[%s591_s2 + $0x38] sm:$0xff]  ;;  %v366_v18 = vpack.c.bf16 %v127_v13, %v126_v12  ;;  %v129_v20 = vld [vmem:[%s593_s4 + $0x28] sm:$0xff] }
   0x6   :  { %364 = vmatpush3.bf16.msra.mxu1 %v363_v15 }
   0x7   :  { %365 = vmatprep.subr.bf16.mxu1 %v414_v3 }
   0x8   :  { %343 = vmatpush3.bf16.msra.mxu0 %v342_v7 }
   0x9   :  { %344 = vmatprep.subr.bf16.mxu0 %v414_v3 }
   0xa   :  { %12 = vsyncpa [#allocation4], 0  ;;  %v348_v21 = vpack.c.bf16 %v33_v17, %v32_v16  ;;  %v34_v22 = vld [vmem:[%s591_s2 + $0x40] sm:$0xff]  ;;  %v35_v23 = vld [vmem:[%s591_s2 + $0x48] sm:$0xff]  ;;  %367 = vmatpush3.bf16.msra.mxu1 %v366_v18  ;;  %v369_v24 = vpack.c.bf16 %v129_v20, %v128_v19  ;;  %v121_v53 = vstv %s589_s0 }
   0xb   :  { %368 = vmatprep.subr.bf16.mxu1 %v414_v3  ;;  %v130_v25 = vld [vmem:[%s593_s4 + $0x30] sm:$0xff]  ;;  %v131_v26 = vld [vmem:[%s593_s4 + $0x38] sm:$0xff]  ;;  %v351_v27 = vpack.c.bf16 %v35_v23, %v34_v22  ;;  %v132_v31 = vld [vmem:[%s593_s4 + $0x40] sm:$0xff] }
   0xc   :  { %346 = vmatpush3.bf16.msra.mxu0 %v345_v14  ;;  %v36_v28 = vld [vmem:[%s591_s2 + $0x50] sm:$0xff]  ;;  %v37_v29 = vld [vmem:[%s591_s2 + $0x58] sm:$0xff]  ;;  %v372_v30 = vpack.c.bf16 %v131_v26, %v130_v25  ;;  %v133_v32 = vld [vmem:[%s593_s4 + $0x48] sm:$0xff] }
   0xd   :  { %347 = vmatprep.subr.bf16.mxu0 %v414_v3  ;;  %v354_v33 = vpack.c.bf16 %v37_v29, %v36_v28  ;;  %v38_v34 = vld [vmem:[%s591_s2 + $0x60] sm:$0xff]  ;;  %v39_v35 = vld [vmem:[%s591_s2 + $0x68] sm:$0xff]  ;;  %v375_v36 = vpack.c.bf16 %v133_v32, %v132_v31  ;;  %v134_v37 = vld [vmem:[%s593_s4 + $0x50] sm:$0xff] }
   0xe   :  { %370 = vmatpush3.bf16.msra.mxu1 %v369_v24  ;;  %v135_v38 = vld [vmem:[%s593_s4 + $0x58] sm:$0xff]  ;;  %v357_v39 = vpack.c.bf16 %v39_v35, %v38_v34  ;;  %v40_v40 = vld [vmem:[%s591_s2 + $0x70] sm:$0xff]  ;;  %v136_v43 = vld [vmem:[%s593_s4 + $0x60] sm:$0xff] }
   0xf   :  { %371 = vmatprep.subr.bf16.mxu1 %v414_v3  ;;  %v41_v41 = vld [vmem:[%s591_s2 + $0x78] sm:$0xff]  ;;  %v378_v42 = vpack.c.bf16 %v135_v38, %v134_v37  ;;  %v137_v44 = vld [vmem:[%s593_s4 + $0x68] sm:$0xff]  ;;  %v25_v47 = vld [vmem:[%s590_s1] sm:$0xff] }
  0x10   :  { %349 = vmatpush3.bf16.msra.mxu0 %v348_v21  ;;  %v360_v45 = vpack.c.bf16 %v41_v41, %v40_v40  ;;  %v381_v46 = vpack.c.bf16 %v137_v44, %v136_v43  ;;  %v138_v48 = vld [vmem:[%s593_s4 + $0x70] sm:$0xff]  ;;  %v139_v49 = vld [vmem:[%s593_s4 + $0x78] sm:$0xff]  ;;  %v232_v51 = vld [vmem:[%s592_s3] ss:$0 sm:$0xff]  ;;  %s417_s4 = smov [#allocation3]  }
  0x11   :  { %350 = vmatprep.subr.bf16.mxu0 %v414_v3  ;;  %v384_v50 = vpack.c.bf16 %v139_v49, %v138_v48  ;;  %v233_v58 = vld [vmem:[%s594_s5] ss:$0 sm:$0xff]  ;;  %s224_s19 = sshll.u32 %s417_s4, 4  ;;  %s225_s19 = int_to_ptr.vmem [resolvable:$true] %s224_s19 }
  0x12   :  { %373 = vmatpush3.bf16.msra.mxu1 %v372_v30  ;;  %s390_s3 = scalar_lea.vmem %s225_s19, 128  ;;  %p395_p1 = scmp.lt.s32.totalorder %s225_s19, %s225_s19 }
  0x13   :  { %374 = vmatprep.subr.bf16.mxu1 %v414_v3  ;;  %p391_p0 = scmp.ne.s32.totalorder %s225_s19, %s390_s3  ;;  %p396_p2 = scmp.lt.s32.totalorder %s390_s3, %s390_s3 }
  0x14   :  { %352 = vmatpush3.bf16.msra.mxu0 %v351_v27 }
  0x15   :  { %353 = vmatprep.subr.bf16.mxu0 %v414_v3  ;;  %p397_p3 = por %p396_p2, %p395_p1 }
  0x16   :  { %376 = vmatpush3.bf16.msra.mxu1 %v375_v36 }
  0x17   :  { %377 = vmatprep.subr.bf16.mxu1 %v414_v3  ;;  %p398_p4 = pnand %p397_p3, %p391_p0 }
  0x18   :  { %355 = vmatpush3.bf16.msra.mxu0 %v354_v33 }
  0x19   :  { %356 = vmatprep.subr.bf16.mxu0 %v414_v3 }
  0x1a   :  { %379 = vmatpush3.bf16.msra.mxu1 %v378_v42 }
  0x1b   :  { %380 = vmatprep.subr.bf16.mxu1 %v414_v3 }
  0x1c   :  { %358 = vmatpush3.bf16.msra.mxu0 %v357_v39 }
  0x1d   :  { %359 = vmatprep.subr.bf16.mxu0 %v414_v3 }
  0x1e   :  { %382 = vmatpush3.bf16.msra.mxu1 %v381_v46 }
  0x1f   :  { %383 = vmatprep.subr.bf16.mxu1 %v414_v3 }
  0x20   :  { %361 = vmatpush3.bf16.msra.mxu0 %v360_v45 }
  0x22   :  { %385 = vmatpush3.bf16.msra.mxu1 %v384_v50 }
  0x23   :  { %301 = vmatmul.mubr.f32.vlgmr.msra.gmra.mrb[0].mxu0 %v25_v47 }
  0xf6   :  { %v115_v52 = vpop.f32.mrb[0].mxu0 }
  0xf7   :  { %v116_v54 = vadd.f32 %v232_v51, %v115_v52  ;;  %v302_v55 = vpop.f32.mrb[1].mxu0 }
  0xf9   :  { %v122_v56 = vmul.f32 %v121_v53, %v116_v54  ;;  %vm120_vm1 = vcmp.ge.f32.partialorder %v116_v54, 0.0 }
  0xfb   :  { %v123_v57 = vsel %vm120_vm1, %v116_v54, %v122_v56 }
  0xfc   :  { %336 = vmatmul.mubr.f32.vlgmr.msra.gmra.mrb[0].mxu1 %v123_v57 }
 0x1cf   :  { %v213_v59 = vpop.f32.mrb[0].mxu1 }
 0x1d0   :  { %v214_v60 = vadd.f32 %v233_v58, %v213_v59  ;;  %v337_v61 = vpop.f32.mrb[1].mxu1 }
 0x1d2   :  { %217 = vst [vmem:[#allocation3] sm:$0xff] %v214_v60 }
 0x1d3   :  { %401 = shalt.err (!%p398_p4)
}
 0x1d4   :  { %s402_s21 = scalar_lea.hbm %s595_s6, 128 }
 0x1d5   :  { %p403_p5 = scmp.ne.s32.totalorder %s595_s6, %s402_s21  ;;  %p406_p6 = scmp.lt.u32.totalorder %s402_s21, %s595_s6 }
 0x1d7   :  { %p408_p7 = pnand %p406_p6, %p403_p5 }
 0x1d9   :  { %411 = shalt.err (!%p408_p7)
}
 0x1da   :  { %227 = dma.vmem_to_hbm [thread:$0]  %s225_s19, 128, %s595_s6, [#allocation4]  }
 0x1db   :  { %412 = dma.done.wait [#allocation4], 128  }
 0x1dc   :  { %413 = vsyncadd [#allocation4], 4294967168 }
 0x1dd   :  { %231 = vsyncpa [#allocation4], 1 }

// kernel: mlp_predictor.1
= control target key start
LH: loop header
LB: loop body
LE: loop exit
PB: predicated region body
PF: predicated region fallthrough
CT: control target
= control target key end

     0   :  { %v414_v3 = vmov 0.0|0.0   ;;  %vm415_vm0 = vmmov 0   ;;  %v416_v6 = vmov 0.0   ;;  %s589_s0 = inlined_call_operand.<no memory space> [shape: f32[1], index: 0, kind: input, shape index: {}]   ;;  %s590_s1 = inlined_call_operand.vmem [shape: f32[8,128], index: 1, kind: input, shape index: {}]   ;;  %s591_s2 = inlined_call_operand.vmem [shape: f32[128,128], index: 2, kind: input, shape index: {}]   ;;  %s592_s3 = inlined_call_operand.vmem [shape: f32[1,128], index: 3, kind: input, shape index: {}]   ;;  %s593_s4 = inlined_call_operand.vmem [shape: f32[128,128], index: 4, kind: input, shape index: {}]   ;;  %s594_s5 = inlined_call_operand.vmem [shape: f32[1,128], index: 5, kind: input, shape index: {}]   ;;  %s595_s6 = inlined_call_operand.hbm [shape: f32[8,128], index: 6, kind: output, shape index: {}]  }
   0x1   :  { %v26_v0 = vld [vmem:[%s591_s2] sm:$0xff]  ;;  %v27_v1 = vld [vmem:[%s591_s2 + $0x8] sm:$0xff]  ;;  %v28_v2 = vld [vmem:[%s591_s2 + $0x10] sm:$0xff]  ;;  %338 = vmatprep.subr.bf16.mxu0 %v414_v3  ;;  %300 = vmatprep.mubr.msk.f32.mxu0 %vm415_vm0, %v416_v6 }
   0x2   :  { %v339_v4 = vpack.c.bf16 %v27_v1, %v26_v0  ;;  %v29_v5 = vld [vmem:[%s591_s2 + $0x18] sm:$0xff]  ;;  %362 = vmatprep.subr.bf16.mxu1 %v414_v3  ;;  %335 = vmatprep.mubr.msk.f32.mxu1 %vm415_vm0, %v416_v6  ;;  %v30_v8 = vld [vmem:[%s591_s2 + $0x20] sm:$0xff]  ;;  %v31_v9 = vld [vmem:[%s591_s2 + $0x28] sm:$0xff] }
   0x3   :  { %v342_v7 = vpack.c.bf16 %v29_v5, %v28_v2  ;;  %v124_v10 = vld [vmem:[%s593_s4] sm:$0xff]  ;;  %v125_v11 = vld [vmem:[%s593_s4 + $0x8] sm:$0xff]  ;;  %v126_v12 = vld [vmem:[%s593_s4 + $0x10] sm:$0xff]  ;;  %v345_v14 = vpack.c.bf16 %v31_v9, %v30_v8 }
   0x4   :  { %340 = vmatpush3.bf16.msra.mxu0 %v339_v4  ;;  %v127_v13 = vld [vmem:[%s593_s4 + $0x18] sm:$0xff]  ;;  %v363_v15 = vpack.c.bf16 %v125_v11, %v124_v10  ;;  %v32_v16 = vld [vmem:[%s591_s2 + $0x30] sm:$0xff]  ;;  %v128_v19 = vld [vmem:[%s593_s4 + $0x20] sm:$0xff] }
   0x5   :  { %341 = vmatprep.subr.bf16.mxu0 %v414_v3  ;;  %v33_v17 = vld [vmem:[%s591_s2 + $0x38] sm:$0xff]  ;;  %v366_v18 = vpack.c.bf16 %v127_v13, %v126_v12  ;;  %v129_v20 = vld [vmem:[%s593_s4 + $0x28] sm:$0xff] }
   0x6   :  { %364 = vmatpush3.bf16.msra.mxu1 %v363_v15 }
   0x7   :  { %365 = vmatprep.subr.bf16.mxu1 %v414_v3 }
   0x8   :  { %343 = vmatpush3.bf16.msra.mxu0 %v342_v7 }
   0x9   :  { %344 = vmatprep.subr.bf16.mxu0 %v414_v3 }
   0xa   :  { %12 = vsyncpa [#allocation4], 0  ;;  %v348_v21 = vpack.c.bf16 %v33_v17, %v32_v16  ;;  %v34_v22 = vld [vmem:[%s591_s2 + $0x40] sm:$0xff]  ;;  %v35_v23 = vld [vmem:[%s591_s2 + $0x48] sm:$0xff]  ;;  %367 = vmatpush3.bf16.msra.mxu1 %v366_v18  ;;  %v369_v24 = vpack.c.bf16 %v129_v20, %v128_v19  ;;  %v121_v53 = vstv %s589_s0 }
   0xb   :  { %368 = vmatprep.subr.bf16.mxu1 %v414_v3  ;;  %v130_v25 = vld [vmem:[%s593_s4 + $0x30] sm:$0xff]  ;;  %v131_v26 = vld [vmem:[%s593_s4 + $0x38] sm:$0xff]  ;;  %v351_v27 = vpack.c.bf16 %v35_v23, %v34_v22  ;;  %v132_v31 = vld [vmem:[%s593_s4 + $0x40] sm:$0xff] }
   0xc   :  { %346 = vmatpush3.bf16.msra.mxu0 %v345_v14  ;;  %v36_v28 = vld [vmem:[%s591_s2 + $0x50] sm:$0xff]  ;;  %v37_v29 = vld [vmem:[%s591_s2 + $0x58] sm:$0xff]  ;;  %v372_v30 = vpack.c.bf16 %v131_v26, %v130_v25  ;;  %v133_v32 = vld [vmem:[%s593_s4 + $0x48] sm:$0xff] }
   0xd   :  { %347 = vmatprep.subr.bf16.mxu0 %v414_v3  ;;  %v354_v33 = vpack.c.bf16 %v37_v29, %v36_v28  ;;  %v38_v34 = vld [vmem:[%s591_s2 + $0x60] sm:$0xff]  ;;  %v39_v35 = vld [vmem:[%s591_s2 + $0x68] sm:$0xff]  ;;  %v375_v36 = vpack.c.bf16 %v133_v32, %v132_v31  ;;  %v134_v37 = vld [vmem:[%s593_s4 + $0x50] sm:$0xff] }
   0xe   :  { %370 = vmatpush3.bf16.msra.mxu1 %v369_v24  ;;  %v135_v38 = vld [vmem:[%s593_s4 + $0x58] sm:$0xff]  ;;  %v357_v39 = vpack.c.bf16 %v39_v35, %v38_v34  ;;  %v40_v40 = vld [vmem:[%s591_s2 + $0x70] sm:$0xff]  ;;  %v136_v43 = vld [vmem:[%s593_s4 + $0x60] sm:$0xff] }
   0xf   :  { %371 = vmatprep.subr.bf16.mxu1 %v414_v3  ;;  %v41_v41 = vld [vmem:[%s591_s2 + $0x78] sm:$0xff]  ;;  %v378_v42 = vpack.c.bf16 %v135_v38, %v134_v37  ;;  %v137_v44 = vld [vmem:[%s593_s4 + $0x68] sm:$0xff]  ;;  %v25_v47 = vld [vmem:[%s590_s1] sm:$0xff] }
  0x10   :  { %349 = vmatpush3.bf16.msra.mxu0 %v348_v21  ;;  %v360_v45 = vpack.c.bf16 %v41_v41, %v40_v40  ;;  %v381_v46 = vpack.c.bf16 %v137_v44, %v136_v43  ;;  %v138_v48 = vld [vmem:[%s593_s4 + $0x70] sm:$0xff]  ;;  %v139_v49 = vld [vmem:[%s593_s4 + $0x78] sm:$0xff]  ;;  %v232_v51 = vld [vmem:[%s592_s3] ss:$0 sm:$0xff]  ;;  %s417_s4 = smov [#allocation3]  }
  0x11   :  { %350 = vmatprep.subr.bf16.mxu0 %v414_v3  ;;  %v384_v50 = vpack.c.bf16 %v139_v49, %v138_v48  ;;  %v233_v58 = vld [vmem:[%s594_s5] ss:$0 sm:$0xff]  ;;  %s224_s19 = sshll.u32 %s417_s4, 4  ;;  %s225_s19 = int_to_ptr.vmem [resolvable:$true] %s224_s19 }
  0x12   :  { %373 = vmatpush3.bf16.msra.mxu1 %v372_v30  ;;  %s390_s3 = scalar_lea.vmem %s225_s19, 128  ;;  %p395_p1 = scmp.lt.s32.totalorder %s225_s19, %s225_s19 }
  0x13   :  { %374 = vmatprep.subr.bf16.mxu1 %v414_v3  ;;  %p391_p0 = scmp.ne.s32.totalorder %s225_s19, %s390_s3  ;;  %p396_p2 = scmp.lt.s32.totalorder %s390_s3, %s390_s3 }
  0x14   :  { %352 = vmatpush3.bf16.msra.mxu0 %v351_v27 }
  0x15   :  { %353 = vmatprep.subr.bf16.mxu0 %v414_v3  ;;  %p397_p3 = por %p396_p2, %p395_p1 }
  0x16   :  { %376 = vmatpush3.bf16.msra.mxu1 %v375_v36 }
  0x17   :  { %377 = vmatprep.subr.bf16.mxu1 %v414_v3  ;;  %p398_p4 = pnand %p397_p3, %p391_p0 }
  0x18   :  { %355 = vmatpush3.bf16.msra.mxu0 %v354_v33 }
  0x19   :  { %356 = vmatprep.subr.bf16.mxu0 %v414_v3 }
  0x1a   :  { %379 = vmatpush3.bf16.msra.mxu1 %v378_v42 }
  0x1b   :  { %380 = vmatprep.subr.bf16.mxu1 %v414_v3 }
  0x1c   :  { %358 = vmatpush3.bf16.msra.mxu0 %v357_v39 }
  0x1d   :  { %359 = vmatprep.subr.bf16.mxu0 %v414_v3 }
  0x1e   :  { %382 = vmatpush3.bf16.msra.mxu1 %v381_v46 }
  0x1f   :  { %383 = vmatprep.subr.bf16.mxu1 %v414_v3 }
  0x20   :  { %361 = vmatpush3.bf16.msra.mxu0 %v360_v45 }
  0x22   :  { %385 = vmatpush3.bf16.msra.mxu1 %v384_v50 }
  0x23   :  { %301 = vmatmul.mubr.f32.vlgmr.msra.gmra.mrb[0].mxu0 %v25_v47 }
  0xf6   :  { %v115_v52 = vpop.f32.mrb[0].mxu0 }
  0xf7   :  { %v116_v54 = vadd.f32 %v232_v51, %v115_v52  ;;  %v302_v55 = vpop.f32.mrb[1].mxu0 }
  0xf9   :  { %v122_v56 = vmul.f32 %v121_v53, %v116_v54  ;;  %vm120_vm1 = vcmp.ge.f32.partialorder %v116_v54, 0.0 }
  0xfb   :  { %v123_v57 = vsel %vm120_vm1, %v116_v54, %v122_v56 }
  0xfc   :  { %336 = vmatmul.mubr.f32.vlgmr.msra.gmra.mrb[0].mxu1 %v123_v57 }
 0x1cf   :  { %v213_v59 = vpop.f32.mrb[0].mxu1 }
 0x1d0   :  { %v214_v60 = vadd.f32 %v233_v58, %v213_v59  ;;  %v337_v61 = vpop.f32.mrb[1].mxu1 }
 0x1d2   :  { %217 = vst [vmem:[#allocation3] sm:$0xff] %v214_v60 }
 0x1d3   :  { %401 = shalt.err (!%p398_p4)
}
 0x1d4   :  { %s402_s21 = scalar_lea.hbm %s595_s6, 128 }
 0x1d5   :  { %p403_p5 = scmp.ne.s32.totalorder %s595_s6, %s402_s21  ;;  %p406_p6 = scmp.lt.u32.totalorder %s402_s21, %s595_s6 }
 0x1d7   :  { %p408_p7 = pnand %p406_p6, %p403_p5 }
 0x1d9   :  { %411 = shalt.err (!%p408_p7)
}
 0x1da   :  { %227 = dma.vmem_to_hbm [thread:$0]  %s225_s19, 128, %s595_s6, [#allocation4]  }
 0x1db   :  { %412 = dma.done.wait [#allocation4], 128  }
 0x1dc   :  { %413 = vsyncadd [#allocation4], 4294967168 }
 0x1dd   :  { %231 = vsyncpa [#allocation4], 1 }

</bundles_post_ra>
